<compile_context>
chip_gen: v5e
topology: v5e:2x2
jax: 0.10.0
libtpu: 0.0.40
codegen_flags: <defaults>
</compile_context>

<pallas_src>
import jax
import jax.numpy as jnp
from jax.experimental import pallas as pl
from jax.experimental.pallas import tpu as pltpu


def _round_up(x, m):
    return (x + m - 1) // m * m


def _cdiv(a, b):
    return (a + b - 1) // b


def _vmem_capacity_bytes():
    try:
        return int(pltpu.get_tpu_info().vmem_capacity_bytes)
    except Exception:
        return 64 * 1024 * 1024  # conservative (v7x-sized) default


def _select_tiles(B, I, H, Hp, act_bytes, w_bytes, out_bytes,
                  max_tm=1024, max_tn=512):
    """Pick (tm, tn, vmem_limit_bytes) under a generation-aware VMEM budget."""
    cap = _vmem_capacity_bytes()
    budget = cap // 2  # headroom for Mosaic-internal scratch

    tn = min(Hp, max_tn)

    def usage(tm, tn):
        # Conservative: assume everything is double-buffered.
        weights = 2 * 2 * (I + H) * tn * w_bytes      # 2 gates x 2 buffers
        biases = 2 * 2 * tn * 4
        xin = 2 * tm * I * act_bytes
        hin = 2 * tm * H * act_bytes
        outs = 2 * 2 * tm * tn * out_bytes            # 2 outputs x 2 buffers
        temps = 2 * tm * tn * 4                       # zi, zc f32 intermediates
        return weights + biases + xin + hin + outs + temps

    tm = min(_round_up(max(B, 1), 8), max_tm)
    while tm > 8 and usage(tm, tn) > budget:
        tm = max(8, ((tm // 2) // 8) * 8)
    while tn > 128 and usage(tm, tn) > budget:
        tn -= 128

    # Megacore (v7x) balance: prefer an even number (>=2) of batch grid steps
    # when the tile stays large; costs one ~0.35 us extra step on 1-TC chips.
    nb = _cdiv(B, tm)
    if nb == 1 and B >= 512:
        tm = _round_up(_cdiv(B, 2), 8)
    elif nb > 1 and nb % 2 == 1:
        tm_even = _round_up(_cdiv(B, nb + 1), 8)
        if tm_even >= 256:
            tm = tm_even

    vmem_limit = int(min(cap, budget + budget // 2))
    return tm, tn, vmem_limit


def _lstm_gates_kernel(x_ref, h_ref, wxi_ref, whi_ref, bi_ref,
                       wxc_ref, whc_ref, bc_ref, i_ref, c_ref):
    """One (batch tile, lane tile): both gates reuse the same x/h tile DMA."""
    x = x_ref[...]
    h = h_ref[...]
    # i gate: MXU matmuls with f32 accumulation, f32 bias, EUP sigmoid.
    zi = jnp.dot(x, wxi_ref[...], preferred_element_type=jnp.float32)
    zi = zi + jnp.dot(h, whi_ref[...], preferred_element_type=jnp.float32)
    zi = zi + bi_ref[...]
    i_ref[...] = jax.nn.sigmoid(zi).astype(i_ref.dtype)
    # candidate gate: same, with tanh.
    zc = jnp.dot(x, wxc_ref[...], preferred_element_type=jnp.float32)
    zc = zc + jnp.dot(h, whc_ref[...], preferred_element_type=jnp.float32)
    zc = zc + bc_ref[...]
    c_ref[...] = jnp.tanh(zc).astype(c_ref.dtype)


def prepare_lstm_params(W_i, b_i, W_c, b_c, *, compute_dtype=jnp.float32,
                        out_dtype=None):
    """One-time weight prep: transpose, split into x/h row blocks, pad hidden
    to a multiple of 128 (lane-dense outputs) and cast to the compute dtype.

    W_i / W_c are PyTorch-convention [hidden, input+hidden].
    """
    H, F = W_i.shape
    I = F - H
    Hp = _round_up(H, 128)
    out_dtype = compute_dtype if out_dtype is None else out_dtype

    def prep(W):
        Wt = jnp.zeros((F, Hp), jnp.float32).at[:, :H].set(W.T.astype(jnp.float32))
        return Wt[:I].astype(compute_dtype), Wt[I:].astype(compute_dtype)

    Wxi, Whi = prep(W_i)          # (I, Hp), (H, Hp)   rows hitting x / h
    Wxc, Whc = prep(W_c)
    bi = jnp.zeros((1, Hp), jnp.float32).at[0, :H].set(b_i.astype(jnp.float32))
    bc = jnp.zeros((1, Hp), jnp.float32).at[0, :H].set(b_c.astype(jnp.float32))

    return dict(Wxi=Wxi, Whi=Whi, bi=bi, Wxc=Wxc, Whc=Whc, bc=bc,
                input_size=I, hidden_size=H, Hp=Hp,
                compute_dtype=compute_dtype, out_dtype=out_dtype)


def _run_pallas(x, h, p, tm, tn, vmem_limit, single_buffer_weights):
    I, H, Hp = p["input_size"], p["hidden_size"], p["Hp"]
    B = x.shape[0]
    nb, nn = _cdiv(B, tm), _cdiv(Hp, tn)
    out_dtype = p["out_dtype"]

    # Grid-invariant weights/bias: single-buffer to halve their VMEM footprint.
    w_kwargs = {}
    if single_buffer_weights:
        w_kwargs["pipeline_mode"] = pl.Buffered(1)

    act_bytes = jnp.dtype(p["compute_dtype"]).itemsize
    w_bytes = act_bytes
    out_bytes = jnp.dtype(out_dtype).itemsize
    cost = pl.CostEstimate(
        flops=4 * B * (I + H) * Hp,
        transcendentals=2 * B * Hp,
        bytes_accessed=(B * (I + H) * act_bytes
                        + 2 * (I + H) * Hp * w_bytes
                        + 2 * Hp * 4
                        + 2 * B * Hp * out_bytes),
    )

    return pl.pallas_call(
        _lstm_gates_kernel,
        out_shape=(jax.ShapeDtypeStruct((B, Hp), out_dtype),
                   jax.ShapeDtypeStruct((B, Hp), out_dtype)),
        grid=(nb, nn),
        in_specs=[
            pl.BlockSpec((tm, I), lambda i, j: (i, 0)),               # x tile
            pl.BlockSpec((tm, H), lambda i, j: (i, 0)),               # h tile
            pl.BlockSpec((I, tn), lambda i, j: (0, j), **w_kwargs),   # W_i x-rows
            pl.BlockSpec((H, tn), lambda i, j: (0, j), **w_kwargs),   # W_i h-rows
            pl.BlockSpec((1, tn), lambda i, j: (0, j), **w_kwargs),   # b_i
            pl.BlockSpec((I, tn), lambda i, j: (0, j), **w_kwargs),   # W_c x-rows
            pl.BlockSpec((H, tn), lambda i, j: (0, j), **w_kwargs),   # W_c h-rows
            pl.BlockSpec((1, tn), lambda i, j: (0, j), **w_kwargs),   # b_c
        ],
        out_specs=(pl.BlockSpec((tm, tn), lambda i, j: (i, j)),
                   pl.BlockSpec((tm, tn), lambda i, j: (i, j))),
        compiler_params=pltpu.CompilerParams(
            dimension_semantics=("parallel", "parallel"),
            vmem_limit_bytes=vmem_limit),
        cost_estimate=cost,
    )(x, h, p["Wxi"], p["Whi"], p["bi"], p["Wxc"], p["Whc"], p["bc"])


def _lstm_step_xla(x_t, h_prev, params):
    """Pure-XLA path for tiny latency-bound shapes."""
    H = params["hidden_size"]
    x = x_t.astype(jnp.float32)
    h = h_prev.astype(jnp.float32)
    zi = (x @ params["Wxi"].astype(jnp.float32)
          + h @ params["Whi"].astype(jnp.float32) + params["bi"])
    zc = (x @ params["Wxc"].astype(jnp.float32)
          + h @ params["Whc"].astype(jnp.float32) + params["bc"])
    od = params["out_dtype"]
    return (jax.nn.sigmoid(zi)[:, :H].astype(od),
            jnp.tanh(zc)[:, :H].astype(od))


def lstm_step_prepared(x_t, h_prev, params, *, xla_fallback_below=0):
    """One LSTM gate step with pre-prepared params. Returns (i_t, c_tilde)."""
    I, H, Hp = params["input_size"], params["hidden_size"], params["Hp"]
    cdt = params["compute_dtype"]
    B = x_t.shape[0]

    # Optional tiny-shape fallback: at these sizes launch + one grid step
    # dominates and the kernel cannot help (opt-in, off by default).
    if B * 2 * Hp < xla_fallback_below:
        return _lstm_step_xla(x_t, h_prev, params)

    x = x_t.astype(cdt)          # no batch padding: ragged last block instead
    h = h_prev.astype(cdt)

    act_bytes = jnp.dtype(cdt).itemsize
    out_bytes = jnp.dtype(params["out_dtype"]).itemsize
    tm, tn, vmem_limit = _select_tiles(B, I, H, Hp, act_bytes, act_bytes, out_bytes)
    nn = _cdiv(Hp, tn)

    if nn == 1:
        # Weights are grid-invariant -> try single-buffering them; fall back
        # gracefully if this JAX build rejects pipeline_mode / Buffered(1).
        try:
            out_i, out_c = _run_pallas(x, h, params, tm, tn, vmem_limit,
                                       single_buffer_weights=True)
        except Exception:
            out_i, out_c = _run_pallas(x, h, params, tm, tn, vmem_limit,
                                       single_buffer_weights=False)
    else:
        out_i, out_c = _run_pallas(x, h, params, tm, tn, vmem_limit,
                                   single_buffer_weights=False)

    if H == Hp:
        return out_i, out_c
    return out_i[:, :H], out_c[:, :H]


def lstm_step(x_t, h_prev, c_prev, W_i, b_i, W_c, b_c, *,
              compute_dtype=jnp.float32, out_dtype=None):
    """Convenience wrapper matching the PyTorch module's forward signature."""
    del c_prev  # unused by the reference forward
    params = prepare_lstm_params(W_i, b_i, W_c, b_c,
                                 compute_dtype=compute_dtype, out_dtype=out_dtype)
    return lstm_step_prepared(x_t, h_prev, params)


def _reference(x_t, h_prev, W_i, b_i, W_c, b_c):
    combined = jnp.concatenate([x_t, h_prev], axis=1)
    i_t = jax.nn.sigmoid(combined @ W_i.T + b_i)
    c_tilde = jnp.tanh(combined @ W_c.T + b_c)
    return i_t, c_tilde


def _make_params(key, input_size, hidden_size):
    """nn.Linear-style init: U(-k, k), k = 1/sqrt(fan_in)."""
    k_wi, k_bi, k_wc, k_bc = jax.random.split(key, 4)
    fan_in = input_size + hidden_size
    bound = 1.0 / (fan_in ** 0.5)
    W_i = jax.random.uniform(k_wi, (hidden_size, fan_in),
                             minval=-bound, maxval=bound, dtype=jnp.float32)
    b_i = jax.random.uniform(k_bi, (hidden_size,),
                             minval=-bound, maxval=bound, dtype=jnp.float32)
    W_c = jax.random.uniform(k_wc, (hidden_size, fan_in),
                             minval=-bound, maxval=bound, dtype=jnp.float32)
    b_c = jax.random.uniform(k_bc, (hidden_size,),
                             minval=-bound, maxval=bound, dtype=jnp.float32)
    return W_i, b_i, W_c, b_c


if __name__ == "__main__":
    key = jax.random.PRNGKey(0)

    # ---- Spec shapes from the PyTorch module: B=1, input=4, hidden=3 ----
    input_size, hidden_size, batch = 4, 3, 1
    k_x, k_h, k_c, k_p = jax.random.split(key, 4)
    x_t = jax.random.normal(k_x, (batch, input_size), dtype=jnp.float32)
    h_prev = jax.random.normal(k_h, (batch, hidden_size), dtype=jnp.float32)
    c_prev = jax.random.normal(k_c, (batch, hidden_size), dtype=jnp.float32)
    W_i, b_i, W_c, b_c = _make_params(k_p, input_size, hidden_size)

    i_ref, c_ref = _reference(x_t, h_prev, W_i, b_i, W_c, b_c)

    # (1) f32 compute path through the Pallas kernel — exact semantics check.
    i_t, c_tilde = jax.block_until_ready(
        lstm_step(x_t, h_prev, c_prev, W_i, b_i, W_c, b_c))
    assert i_t.shape == (batch, hidden_size) and c_tilde.shape == (batch, hidden_size)
    assert jnp.allclose(i_t, i_ref, atol=1e-5), "i_t mismatch (f32)"
    assert jnp.allclose(c_tilde, c_ref, atol=1e-5), "c_tilde mismatch (f32)"

    # (2) bf16 streaming path (bf16 operands + bf16 writeback; f32 accumulate,
    #     bias and activations) — looser tolerance.
    params_bf16 = prepare_lstm_params(W_i, b_i, W_c, b_c,
                                      compute_dtype=jnp.bfloat16)
    i_bf, c_bf = jax.block_until_ready(
        lstm_step_prepared(x_t, h_prev, params_bf16))
    assert jnp.allclose(i_bf.astype(jnp.float32), i_ref, atol=5e-2), "i_t mismatch (bf16)"
    assert jnp.allclose(c_bf.astype(jnp.float32), c_ref, atol=5e-2), "c_tilde mismatch (bf16)"

    # (3) Ragged batch + padded hidden: partial last batch block, column slice
    #     (H=96 < Hp=128) and the even-grid (2-step) megacore split.
    B2, I2, H2 = 520, 64, 96
    k2 = jax.random.PRNGKey(1)
    k_x2, k_h2, k_p2 = jax.random.split(k2, 3)
    x2 = jax.random.normal(k_x2, (B2, I2), dtype=jnp.float32)
    h2 = jax.random.normal(k_h2, (B2, H2), dtype=jnp.float32)
    W_i2, b_i2, W_c2, b_c2 = _make_params(k_p2, I2, H2)
    params2 = prepare_lstm_params(W_i2, b_i2, W_c2, b_c2)
    i2, c2 = jax.block_until_ready(lstm_step_prepared(x2, h2, params2))
    i2_ref, c2_ref = _reference(x2, h2, W_i2, b_i2, W_c2, b_c2)
    assert jnp.allclose(i2, i2_ref, atol=2e-2), "i_t mismatch (ragged batch)"
    assert jnp.allclose(c2, c2_ref, atol=2e-2), "c_tilde mismatch (ragged batch)"

    # (4) Larger hidden: exercises the lane-tiled second grid axis with a
    #     partial last lane block (Hp=640, tn=512).
    B3, I3, H3 = 64, 32, 640
    k3 = jax.random.PRNGKey(2)
    k_x3, k_h3, k_p3 = jax.random.split(k3, 3)
    x3 = jax.random.normal(k_x3, (B3, I3), dtype=jnp.float32)
    h3 = jax.random.normal(k_h3, (B3, H3), dtype=jnp.float32)
    W_i3, b_i3, W_c3, b_c3 = _make_params(k_p3, I3, H3)
    params3 = prepare_lstm_params(W_i3, b_i3, W_c3, b_c3)
    i3, c3 = jax.block_until_ready(lstm_step_prepared(x3, h3, params3))
    i3_ref, c3_ref = _reference(x3, h3, W_i3, b_i3, W_c3, b_c3)
    assert jnp.allclose(i3, i3_ref, atol=2e-2), "i_t mismatch (lane-tiled)"
    assert jnp.allclose(c3, c3_ref, atol=2e-2), "c_tilde mismatch (lane-tiled)"

    # (5) Tiny-shape pure-XLA fallback (opt-in) agrees with the reference.
    i_x, c_x = lstm_step_prepared(x_t, h_prev,
                                  prepare_lstm_params(W_i, b_i, W_c, b_c),
                                  xla_fallback_below=1 << 20)
    assert jnp.allclose(i_x, i_ref, atol=1e-5), "i_t mismatch (xla fallback)"
    assert jnp.allclose(c_x, c_ref, atol=1e-5), "c_tilde mismatch (xla fallback)"

    print("KERNEL_OK")
</pallas_src>

<mosaic_0001>
module attributes {stable_mosaic.version = 11 : i64} {
  func.func @_lstm_gates_kernel(%arg0: i32, %arg1: i32, %arg2: memref<8x4xf32, #tpu.memory_space<vmem>>, %arg3: memref<8x3xf32, #tpu.memory_space<vmem>>, %arg4: memref<4x128xf32, #tpu.memory_space<vmem>>, %arg5: memref<3x128xf32, #tpu.memory_space<vmem>>, %arg6: memref<1x128xf32, #tpu.memory_space<vmem>>, %arg7: memref<4x128xf32, #tpu.memory_space<vmem>>, %arg8: memref<3x128xf32, #tpu.memory_space<vmem>>, %arg9: memref<1x128xf32, #tpu.memory_space<vmem>>, %arg10: memref<8x128xf32, #tpu.memory_space<vmem>>, %arg11: memref<8x128xf32, #tpu.memory_space<vmem>>) attributes {dimension_semantics = [#tpu.dimension_semantics<parallel>, #tpu.dimension_semantics<parallel>], iteration_bounds = array<i64: 1, 1>, scalar_prefetch = 0 : i64, scratch_operands = 0 : i64, tpu.core_type = #tpu.core_type<tc>, window_params = [{transform_indices = @transform_0, window_bounds = array<i64: 8, 4>}, {transform_indices = @transform_1, window_bounds = array<i64: 8, 3>}, {pipeline_mode = #tpu.pipeline_mode<synchronous>, transform_indices = @transform_2, window_bounds = array<i64: 4, 128>}, {pipeline_mode = #tpu.pipeline_mode<synchronous>, transform_indices = @transform_3, window_bounds = array<i64: 3, 128>}, {pipeline_mode = #tpu.pipeline_mode<synchronous>, transform_indices = @transform_4, window_bounds = array<i64: 1, 128>}, {pipeline_mode = #tpu.pipeline_mode<synchronous>, transform_indices = @transform_5, window_bounds = array<i64: 4, 128>}, {pipeline_mode = #tpu.pipeline_mode<synchronous>, transform_indices = @transform_6, window_bounds = array<i64: 3, 128>}, {pipeline_mode = #tpu.pipeline_mode<synchronous>, transform_indices = @transform_7, window_bounds = array<i64: 1, 128>}, {transform_indices = @transform_8, window_bounds = array<i64: 8, 128>}, {transform_indices = @transform_9, window_bounds = array<i64: 8, 128>}]} {
    %c0 = arith.constant 0 : index
    %c0_0 = arith.constant 0 : index
    %0 = vector.load %arg2[%c0, %c0_0] : memref<8x4xf32, #tpu.memory_space<vmem>>, vector<8x4xf32>
    %c0_1 = arith.constant 0 : index
    %c0_2 = arith.constant 0 : index
    %1 = vector.load %arg3[%c0_1, %c0_2] : memref<8x3xf32, #tpu.memory_space<vmem>>, vector<8x3xf32>
    %c0_3 = arith.constant 0 : index
    %c0_4 = arith.constant 0 : index
    %2 = vector.load %arg4[%c0_3, %c0_4] : memref<4x128xf32, #tpu.memory_space<vmem>>, vector<4x128xf32>
    %cst = arith.constant dense<0.000000e+00> : vector<8x128xf32>
    %3 = tpu.matmul %0, %2, %cst {dimension_numbers = #tpu.dot_dimension_numbers<[1], [0], [0], [1], [0, 0, 1, 1], [], []>} : vector<8x4xf32>, vector<4x128xf32>, vector<8x128xf32> -> vector<8x128xf32>
    %c0_5 = arith.constant 0 : index
    %c0_6 = arith.constant 0 : index
    %4 = vector.load %arg5[%c0_5, %c0_6] : memref<3x128xf32, #tpu.memory_space<vmem>>, vector<3x128xf32>
    %cst_7 = arith.constant dense<0.000000e+00> : vector<8x128xf32>
    %5 = tpu.matmul %1, %4, %cst_7 {dimension_numbers = #tpu.dot_dimension_numbers<[1], [0], [0], [1], [0, 0, 1, 1], [], []>} : vector<8x3xf32>, vector<3x128xf32>, vector<8x128xf32> -> vector<8x128xf32>
    %6 = arith.addf %3, %5 : vector<8x128xf32>
    %c0_8 = arith.constant 0 : index
    %c0_9 = arith.constant 0 : index
    %7 = vector.load %arg6[%c0_8, %c0_9] : memref<1x128xf32, #tpu.memory_space<vmem>>, vector<1x128xf32>
    %8 = vector.broadcast %7 : vector<1x128xf32> to vector<8x128xf32>
    %9 = arith.addf %6, %8 : vector<8x128xf32>
    %10 = arith.negf %9 : vector<8x128xf32>
    %11 = math.exp %10 : vector<8x128xf32>
    %cst_10 = arith.constant 1.000000e+00 : f32
    %12 = vector.broadcast %cst_10 : f32 to vector<8x128xf32>
    %13 = arith.addf %12, %11 : vector<8x128xf32>
    %14 = arith.divf %12, %13 : vector<8x128xf32>
    %c0_11 = arith.constant 0 : index
    %c0_12 = arith.constant 0 : index
    %15 = vector.load %arg10[%c0_11, %c0_12] : memref<8x128xf32, #tpu.memory_space<vmem>>, vector<8x128xf32>
    tpu.vector_store %arg10[%c0_11, %c0_12], %14 {strides = array<i32>} : memref<8x128xf32, #tpu.memory_space<vmem>>, vector<8x128xf32>,
    %c0_13 = arith.constant 0 : index
    %c0_14 = arith.constant 0 : index
    %16 = vector.load %arg7[%c0_13, %c0_14] : memref<4x128xf32, #tpu.memory_space<vmem>>, vector<4x128xf32>
    %cst_15 = arith.constant dense<0.000000e+00> : vector<8x128xf32>
    %17 = tpu.matmul %0, %16, %cst_15 {dimension_numbers = #tpu.dot_dimension_numbers<[1], [0], [0], [1], [0, 0, 1, 1], [], []>} : vector<8x4xf32>, vector<4x128xf32>, vector<8x128xf32> -> vector<8x128xf32>
    %c0_16 = arith.constant 0 : index
    %c0_17 = arith.constant 0 : index
    %18 = vector.load %arg8[%c0_16, %c0_17] : memref<3x128xf32, #tpu.memory_space<vmem>>, vector<3x128xf32>
    %cst_18 = arith.constant dense<0.000000e+00> : vector<8x128xf32>
    %19 = tpu.matmul %1, %18, %cst_18 {dimension_numbers = #tpu.dot_dimension_numbers<[1], [0], [0], [1], [0, 0, 1, 1], [], []>} : vector<8x3xf32>, vector<3x128xf32>, vector<8x128xf32> -> vector<8x128xf32>
    %20 = arith.addf %17, %19 : vector<8x128xf32>
    %c0_19 = arith.constant 0 : index
    %c0_20 = arith.constant 0 : index
    %21 = vector.load %arg9[%c0_19, %c0_20] : memref<1x128xf32, #tpu.memory_space<vmem>>, vector<1x128xf32>
    %22 = vector.broadcast %21 : vector<1x128xf32> to vector<8x128xf32>
    %23 = arith.addf %20, %22 : vector<8x128xf32>
    %24 = math.tanh %23 : vector<8x128xf32>
    %c0_21 = arith.constant 0 : index
    %c0_22 = arith.constant 0 : index
    %25 = vector.load %arg11[%c0_21, %c0_22] : memref<8x128xf32, #tpu.memory_space<vmem>>, vector<8x128xf32>
    tpu.vector_store %arg11[%c0_21, %c0_22], %24 {strides = array<i32>} : memref<8x128xf32, #tpu.memory_space<vmem>>, vector<8x128xf32>,
    return
  }
  func.func @transform_0(%arg0: i32, %arg1: i32) -> (i32, i32) {
    %c0_i32 = arith.constant 0 : i32
    %c0_i32_0 = arith.constant 0 : i32
    return %arg0, %c0_i32 : i32, i32
  }
  func.func @transform_1(%arg0: i32, %arg1: i32) -> (i32, i32) {
    %c0_i32 = arith.constant 0 : i32
    %c0_i32_0 = arith.constant 0 : i32
    return %arg0, %c0_i32 : i32, i32
  }
  func.func @transform_2(%arg0: i32, %arg1: i32) -> (i32, i32) {
    %c0_i32 = arith.constant 0 : i32
    %c0_i32_0 = arith.constant 0 : i32
    return %c0_i32, %arg1 : i32, i32
  }
  func.func @transform_3(%arg0: i32, %arg1: i32) -> (i32, i32) {
    %c0_i32 = arith.constant 0 : i32
    %c0_i32_0 = arith.constant 0 : i32
    return %c0_i32, %arg1 : i32, i32
  }
  func.func @transform_4(%arg0: i32, %arg1: i32) -> (i32, i32) {
    %c0_i32 = arith.constant 0 : i32
    %c0_i32_0 = arith.constant 0 : i32
    return %c0_i32, %arg1 : i32, i32
  }
  func.func @transform_5(%arg0: i32, %arg1: i32) -> (i32, i32) {
    %c0_i32 = arith.constant 0 : i32
    %c0_i32_0 = arith.constant 0 : i32
    return %c0_i32, %arg1 : i32, i32
  }
  func.func @transform_6(%arg0: i32, %arg1: i32) -> (i32, i32) {
    %c0_i32 = arith.constant 0 : i32
    %c0_i32_0 = arith.constant 0 : i32
    return %c0_i32, %arg1 : i32, i32
  }
  func.func @transform_7(%arg0: i32, %arg1: i32) -> (i32, i32) {
    %c0_i32 = arith.constant 0 : i32
    %c0_i32_0 = arith.constant 0 : i32
    return %c0_i32, %arg1 : i32, i32
  }
  func.func @transform_8(%arg0: i32, %arg1: i32) -> (i32, i32) {
    %c0_i32 = arith.constant 0 : i32
    return %arg0, %arg1 : i32, i32
  }
  func.func @transform_9(%arg0: i32, %arg1: i32) -> (i32, i32) {
    %c0_i32 = arith.constant 0 : i32
    return %arg0, %arg1 : i32, i32
  }
}

module attributes {stable_mosaic.version = 11 : i64} {
  func.func @_lstm_gates_kernel(%arg0: i32, %arg1: i32, %arg2: memref<8x4xf32, #tpu.memory_space<vmem>>, %arg3: memref<8x3xf32, #tpu.memory_space<vmem>>, %arg4: memref<4x128xf32, #tpu.memory_space<vmem>>, %arg5: memref<3x128xf32, #tpu.memory_space<vmem>>, %arg6: memref<1x128xf32, #tpu.memory_space<vmem>>, %arg7: memref<4x128xf32, #tpu.memory_space<vmem>>, %arg8: memref<3x128xf32, #tpu.memory_space<vmem>>, %arg9: memref<1x128xf32, #tpu.memory_space<vmem>>, %arg10: memref<8x128xf32, #tpu.memory_space<vmem>>, %arg11: memref<8x128xf32, #tpu.memory_space<vmem>>) attributes {dimension_semantics = [#tpu.dimension_semantics<parallel>, #tpu.dimension_semantics<parallel>], iteration_bounds = array<i64: 1, 1>, scalar_prefetch = 0 : i64, scratch_operands = 0 : i64, tpu.core_type = #tpu.core_type<tc>, window_params = [{transform_indices = @transform_0, window_bounds = array<i64: 8, 4>}, {transform_indices = @transform_1, window_bounds = array<i64: 8, 3>}, {transform_indices = @transform_2, window_bounds = array<i64: 4, 128>}, {transform_indices = @transform_3, window_bounds = array<i64: 3, 128>}, {transform_indices = @transform_4, window_bounds = array<i64: 1, 128>}, {transform_indices = @transform_5, window_bounds = array<i64: 4, 128>}, {transform_indices = @transform_6, window_bounds = array<i64: 3, 128>}, {transform_indices = @transform_7, window_bounds = array<i64: 1, 128>}, {transform_indices = @transform_8, window_bounds = array<i64: 8, 128>}, {transform_indices = @transform_9, window_bounds = array<i64: 8, 128>}]} {
    %c0 = arith.constant 0 : index
    %c0_0 = arith.constant 0 : index
    %0 = vector.load %arg2[%c0, %c0_0] : memref<8x4xf32, #tpu.memory_space<vmem>>, vector<8x4xf32>
    %c0_1 = arith.constant 0 : index
    %c0_2 = arith.constant 0 : index
    %1 = vector.load %arg3[%c0_1, %c0_2] : memref<8x3xf32, #tpu.memory_space<vmem>>, vector<8x3xf32>
    %c0_3 = arith.constant 0 : index
    %c0_4 = arith.constant 0 : index
    %2 = vector.load %arg4[%c0_3, %c0_4] : memref<4x128xf32, #tpu.memory_space<vmem>>, vector<4x128xf32>
    %cst = arith.constant dense<0.000000e+00> : vector<8x128xf32>
    %3 = tpu.matmul %0, %2, %cst {dimension_numbers = #tpu.dot_dimension_numbers<[1], [0], [0], [1], [0, 0, 1, 1], [], []>} : vector<8x4xf32>, vector<4x128xf32>, vector<8x128xf32> -> vector<8x128xf32>
    %c0_5 = arith.constant 0 : index
    %c0_6 = arith.constant 0 : index
    %4 = vector.load %arg5[%c0_5, %c0_6] : memref<3x128xf32, #tpu.memory_space<vmem>>, vector<3x128xf32>
    %cst_7 = arith.constant dense<0.000000e+00> : vector<8x128xf32>
    %5 = tpu.matmul %1, %4, %cst_7 {dimension_numbers = #tpu.dot_dimension_numbers<[1], [0], [0], [1], [0, 0, 1, 1], [], []>} : vector<8x3xf32>, vector<3x128xf32>, vector<8x128xf32> -> vector<8x128xf32>
    %6 = arith.addf %3, %5 : vector<8x128xf32>
    %c0_8 = arith.constant 0 : index
    %c0_9 = arith.constant 0 : index
    %7 = vector.load %arg6[%c0_8, %c0_9] : memref<1x128xf32, #tpu.memory_space<vmem>>, vector<1x128xf32>
    %8 = vector.broadcast %7 : vector<1x128xf32> to vector<8x128xf32>
    %9 = arith.addf %6, %8 : vector<8x128xf32>
    %10 = arith.negf %9 : vector<8x128xf32>
    %11 = math.exp %10 : vector<8x128xf32>
    %cst_10 = arith.constant 1.000000e+00 : f32
    %12 = vector.broadcast %cst_10 : f32 to vector<8x128xf32>
    %13 = arith.addf %12, %11 : vector<8x128xf32>
    %14 = arith.divf %12, %13 : vector<8x128xf32>
    %c0_11 = arith.constant 0 : index
    %c0_12 = arith.constant 0 : index
    %15 = vector.load %arg10[%c0_11, %c0_12] : memref<8x128xf32, #tpu.memory_space<vmem>>, vector<8x128xf32>
    tpu.vector_store %arg10[%c0_11, %c0_12], %14 {strides = array<i32>} : memref<8x128xf32, #tpu.memory_space<vmem>>, vector<8x128xf32>,
    %c0_13 = arith.constant 0 : index
    %c0_14 = arith.constant 0 : index
    %16 = vector.load %arg7[%c0_13, %c0_14] : memref<4x128xf32, #tpu.memory_space<vmem>>, vector<4x128xf32>
    %cst_15 = arith.constant dense<0.000000e+00> : vector<8x128xf32>
    %17 = tpu.matmul %0, %16, %cst_15 {dimension_numbers = #tpu.dot_dimension_numbers<[1], [0], [0], [1], [0, 0, 1, 1], [], []>} : vector<8x4xf32>, vector<4x128xf32>, vector<8x128xf32> -> vector<8x128xf32>
    %c0_16 = arith.constant 0 : index
    %c0_17 = arith.constant 0 : index
    %18 = vector.load %arg8[%c0_16, %c0_17] : memref<3x128xf32, #tpu.memory_space<vmem>>, vector<3x128xf32>
    %cst_18 = arith.constant dense<0.000000e+00> : vector<8x128xf32>
    %19 = tpu.matmul %1, %18, %cst_18 {dimension_numbers = #tpu.dot_dimension_numbers<[1], [0], [0], [1], [0, 0, 1, 1], [], []>} : vector<8x3xf32>, vector<3x128xf32>, vector<8x128xf32> -> vector<8x128xf32>
    %20 = arith.addf %17, %19 : vector<8x128xf32>
    %c0_19 = arith.constant 0 : index
    %c0_20 = arith.constant 0 : index
    %21 = vector.load %arg9[%c0_19, %c0_20] : memref<1x128xf32, #tpu.memory_space<vmem>>, vector<1x128xf32>
    %22 = vector.broadcast %21 : vector<1x128xf32> to vector<8x128xf32>
    %23 = arith.addf %20, %22 : vector<8x128xf32>
    %24 = math.tanh %23 : vector<8x128xf32>
    %c0_21 = arith.constant 0 : index
    %c0_22 = arith.constant 0 : index
    %25 = vector.load %arg11[%c0_21, %c0_22] : memref<8x128xf32, #tpu.memory_space<vmem>>, vector<8x128xf32>
    tpu.vector_store %arg11[%c0_21, %c0_22], %24 {strides = array<i32>} : memref<8x128xf32, #tpu.memory_space<vmem>>, vector<8x128xf32>,
    return
  }
  func.func @transform_0(%arg0: i32, %arg1: i32) -> (i32, i32) {
    %c0_i32 = arith.constant 0 : i32
    %c0_i32_0 = arith.constant 0 : i32
    return %arg0, %c0_i32 : i32, i32
  }
  func.func @transform_1(%arg0: i32, %arg1: i32) -> (i32, i32) {
    %c0_i32 = arith.constant 0 : i32
    %c0_i32_0 = arith.constant 0 : i32
    return %arg0, %c0_i32 : i32, i32
  }
  func.func @transform_2(%arg0: i32, %arg1: i32) -> (i32, i32) {
    %c0_i32 = arith.constant 0 : i32
    %c0_i32_0 = arith.constant 0 : i32
    return %c0_i32, %arg1 : i32, i32
  }
  func.func @transform_3(%arg0: i32, %arg1: i32) -> (i32, i32) {
    %c0_i32 = arith.constant 0 : i32
    %c0_i32_0 = arith.constant 0 : i32
    return %c0_i32, %arg1 : i32, i32
  }
  func.func @transform_4(%arg0: i32, %arg1: i32) -> (i32, i32) {
    %c0_i32 = arith.constant 0 : i32
    %c0_i32_0 = arith.constant 0 : i32
    return %c0_i32, %arg1 : i32, i32
  }
  func.func @transform_5(%arg0: i32, %arg1: i32) -> (i32, i32) {
    %c0_i32 = arith.constant 0 : i32
    %c0_i32_0 = arith.constant 0 : i32
    return %c0_i32, %arg1 : i32, i32
  }
  func.func @transform_6(%arg0: i32, %arg1: i32) -> (i32, i32) {
    %c0_i32 = arith.constant 0 : i32
    %c0_i32_0 = arith.constant 0 : i32
    return %c0_i32, %arg1 : i32, i32
  }
  func.func @transform_7(%arg0: i32, %arg1: i32) -> (i32, i32) {
    %c0_i32 = arith.constant 0 : i32
    %c0_i32_0 = arith.constant 0 : i32
    return %c0_i32, %arg1 : i32, i32
  }
  func.func @transform_8(%arg0: i32, %arg1: i32) -> (i32, i32) {
    %c0_i32 = arith.constant 0 : i32
    return %arg0, %arg1 : i32, i32
  }
  func.func @transform_9(%arg0: i32, %arg1: i32) -> (i32, i32) {
    %c0_i32 = arith.constant 0 : i32
    return %arg0, %arg1 : i32, i32
  }
}

</mosaic_0001>

<bundles_post_ra>
// kernel: tpu_custom_call.1
= control target key start
LH: loop header
LB: loop body
LE: loop exit
PB: predicated region body
PF: predicated region fallthrough
CT: control target
= control target key end

     0   :  { %15 = vsyncpa [#allocation3], 0  ;;  %s632_s0 = inlined_call_operand.hbm [shape: f32[1,4], index: 0, kind: input, shape index: {}]   ;;  %s633_s1 = inlined_call_operand.hbm [shape: f32[1,3], index: 1, kind: input, shape index: {}]   ;;  %s634_s2 = inlined_call_operand.hbm [shape: f32[4,128], index: 2, kind: input, shape index: {}]   ;;  %s635_s3 = inlined_call_operand.hbm [shape: f32[3,128], index: 3, kind: input, shape index: {}]   ;;  %s636_s4 = inlined_call_operand.hbm [shape: f32[1,128], index: 4, kind: input, shape index: {}]   ;;  %s637_s5 = inlined_call_operand.vmem [shape: f32[4,128], index: 5, kind: input, shape index: {}]   ;;  %s638_s6 = inlined_call_operand.hbm [shape: f32[3,128], index: 6, kind: input, shape index: {}]   ;;  %s639_s7 = inlined_call_operand.vmem [shape: f32[1,128], index: 7, kind: input, shape index: {}]   ;;  %s640_s8 = inlined_call_operand.hbm [shape: f32[1,128], index: 8, kind: output, shape index: {0}]   ;;  %s641_s9 = inlined_call_operand.hbm [shape: f32[1,128], index: 9, kind: output, shape index: {1}]  }
   0x1   :  { %16 = vsyncpa [#allocation6], 0 }
   0x2   :  { %17 = vsyncpa [#allocation9], 0 }
   0x3   :  { %18 = vsyncpa [#allocation12], 0 }
   0x4   :  { %19 = vsyncpa [#allocation4], 0 }
   0x5   :  { %20 = vsyncpa [#allocation15], 0 }
   0x6   :  { %24 = vsyncadd [#allocation3], 112  ;;  %s25_s11 = sshll.u32 %s632_s0, 4  ;;  %s530_s12 = smov [#allocation2]   ;;  %s26_s11 = int_to_ptr.hbm [resolvable:$true] %s25_s11 }
   0x7   :  { %s27_s13 = sshll.u32 %s530_s12, 4  ;;  %s531_s14 = smov 16   ;;  %s28_s13 = int_to_ptr.vmem [resolvable:$true] %s27_s13 }
   0x8   :  { %s532_s15 = smov 1  }
   0x9   :  { %33 = dma.hbm_to_vmem [thread:$0]  %s26_s11, 16, %s28_s13, [#allocation3], %s531_s14, %s531_s14, %s532_s15  }
   0xa   :  { %37 = vsyncadd [#allocation6], 112  ;;  %s38_s18 = sshll.u32 %s633_s1, 4  ;;  %s533_s19 = smov [#allocation5]   ;;  %s39_s18 = int_to_ptr.hbm [resolvable:$true] %s38_s18 }
   0xb   :  { %s40_s20 = sshll.u32 %s533_s19, 4  ;;  %s63_s22 = sshll.u32 %s635_s3, 4  ;;  %s41_s20 = int_to_ptr.vmem [resolvable:$true] %s40_s20  ;;  %s64_s22 = int_to_ptr.hbm [resolvable:$true] %s63_s22 }
   0xc   :  { %46 = dma.hbm_to_vmem [thread:$0]  %s39_s18, 16, %s41_s20, [#allocation6], %s531_s14, %s531_s14, %s532_s15  }
   0xd   :  { %s534_s23 = smov [#allocation8]   ;;  %s52_s27 = sshll.u32 %s634_s2, 4  ;;  %s53_s27 = int_to_ptr.hbm [resolvable:$true] %s52_s27 }
   0xe   :  { %s65_s24 = sshll.u32 %s534_s23, 4  ;;  %s74_s29 = sshll.u32 %s636_s4, 4  ;;  %s66_s24 = int_to_ptr.vmem [resolvable:$true] %s65_s24  ;;  %s75_s29 = int_to_ptr.hbm [resolvable:$true] %s74_s29 }
   0xf   :  { %68 = dma.hbm_to_vmem [thread:$0]  %s64_s22, 64, %s66_s24, [#allocation9]  }
  0x10   :  { %s535_s30 = smov [#allocation7]   ;;  %s536_s10 = smov [#allocation10]  }
  0x11   :  { %s54_s3 = sshll.u32 %s535_s30, 4  ;;  %s76_s11 = sshll.u32 %s536_s10, 4  ;;  %s55_s3 = int_to_ptr.vmem [resolvable:$true] %s54_s3  ;;  %s77_s11 = int_to_ptr.vmem [resolvable:$true] %s76_s11 }
  0x12   :  { %57 = dma.hbm_to_vmem [thread:$0]  %s53_s27, 64, %s55_s3, [#allocation6]  }
  0x13   :  { %s87_s16 = sshll.u32 %s638_s6, 4  ;;  %s537_s2 = smov [#allocation11]   ;;  %s88_s16 = int_to_ptr.hbm [resolvable:$true] %s87_s16 }
  0x14   :  { %79 = dma.hbm_to_vmem [thread:$0]  %s75_s29, 16, %s77_s11, [#allocation9]  }
  0x15   :  { %s89_s17 = sshll.u32 %s537_s2, 4  ;;  %s90_s17 = int_to_ptr.vmem [resolvable:$true] %s89_s17 }
  0x16   :  { %92 = dma.hbm_to_vmem [thread:$0]  %s88_s16, 64, %s90_s17, [#allocation12]  }
  0x17   :  { %518 = dma.done.wait [#allocation3], 128  }
  0x18   :  { %519 = vsyncadd [#allocation3], 4294967168 }
  0x19   :  { %520 = dma.done.wait [#allocation6], 192  }
  0x1a   :  { %521 = vsyncadd [#allocation6], 4294967104 }
  0x1b   :  { %522 = dma.done.wait [#allocation9], 80  }
  0x1c   :  { %523 = vsyncadd [#allocation9], 4294967216 }
  0x1d   :  { %524 = dma.done.wait [#allocation12], 64  }
  0x1e   :  { %525 = vsyncadd [#allocation12], 4294967232  ;;  %vm127_vm0 = vcmask 1042432   ;;  %vm155_vm1 = vcmask 1043456   ;;  %vm123_vm2 = vcmask 23552   ;;  %vm151_vm3 = vcmask 31744  }
  0x1f   :  { %v122_v0 = vld [vmem:[#allocation8] sm:$0x7]  ;;  %v121_v1 = vld [vmem:[#allocation7] sm:$0xf]  ;;  %v120_v2 = vld [vmem:[#allocation5] sm:$0xff] }
  0x20   :  { %299 = vmatpush.msk.msra.mxu0 %vm127_vm0, %v122_v0  ;;  %301 = vmatpush.msk.msra.mxu1 %vm155_vm1, %v121_v1  ;;  %v119_v3 = vld [vmem:[#allocation2] sm:$0xff]  ;;  %v205_v4 = vld [vmem:[#allocation11] sm:$0x7]  ;;  %v318_v6 = vld [vmem:[#allocation10] ss:$0 sm:$0xff] }
  0x21   :  { %v204_v5 = vld [vmem:[%s637_s5] sm:$0xf]  ;;  %300 = vmatmul.msk.f32.vlgmr.msra.gmra.mxu0 %vm123_vm2, %v120_v2  ;;  %302 = vmatmul.msk.f32.vlgmr.msra.gmra.mxu1 %vm151_vm3, %v119_v3 }
  0x22   :  { %304 = vmatpush.msk.msra.mxu2 %vm127_vm0, %v205_v4  ;;  %306 = vmatpush.msk.msra.mxu3 %vm155_vm1, %v204_v5  ;;  %v319_v12 = vld [vmem:[%s639_s7] ss:$0 sm:$0xff] }
  0x23   :  { %305 = vmatmul.msk.f32.vlgmr.msra.gmra.mxu2 %vm123_vm2, %v120_v2  ;;  %307 = vmatmul.msk.f32.vlgmr.msra.gmra.mxu3 %vm151_vm3, %v119_v3 }
  0x9e   :  { %v148_v7 = vpop.f32.mrf.mxu0  ;;  %v176_v8 = vpop.f32.mrf.mxu1 }
  0x9f   :  { %v177_v9 = vadd.f32 %v176_v8, %v148_v7 }
  0xa1   :  { %v183_v10 = vadd.f32 %v318_v6, %v177_v9 }
  0xa3   :  { %v303_v11 = vmul.f32 -1.442695, %v183_v10 }
  0xa5   :  { %320 = vpow2.f32 %v303_v11 }
  0xa6   :  { %v226_v13 = vpop.f32.mrf.mxu2  ;;  %v249_v14 = vpop.f32.mrf.mxu3 }
  0xa7   :  { %v250_v15 = vadd.f32 %v249_v14, %v226_v13 }
  0xa9   :  { %v256_v16 = vadd.f32 %v319_v12, %v250_v15 }
  0xab   :  { %v321_v17 = vpop.eup %320  ;;  %322 = vtanh.f32 %v256_v16 }
  0xac   :  { %v187_v18 = vadd.f32 1.0, %v321_v17 }
  0xae   :  { %324 = vrcp.f32 %v187_v18  ;;  %v199_v23 = vand.u32 2147483648, %v187_v18  ;;  %v197_v25 = vand.u32 2147483647, %v187_v18  ;;  %vm193_vm5 = vweird.f32 %v187_v18 }
  0xb0   :  { %v200_v27 = vor.u32 1.1754944e-38, %v199_v23  ;;  %vm198_vm7 = vcmp.eq.f32.partialorder %v197_v25, 8.507059e+37 }
  0xb1   :  { %v323_v19 = vpop.eup %322 }
  0xb2   :  { %258 = vst [vmem:[#allocation14] sm:$0xff] %v323_v19 }
  0xb4   :  { %v325_v20 = vpop.eup %324 }
  0xb5   :  { %v189_v21 = vmul.f32 %v325_v20, %v187_v18  ;;  %vm194_vm4 = vweird.f32 %v325_v20 }
  0xb6   :  { %vm195_vm6 = vmor %vm193_vm5, %vm194_vm4 }
  0xb7   :  { %v190_v22 = vsub.f32 1.0, %v189_v21 }
  0xb9   :  { %v191_v24 = vmul.f32 %v325_v20, %v190_v22 }
  0xbb   :  { %v192_v26 = vadd.f32 %v325_v20, %v191_v24 }
  0xbd   :  { %v196_v28 = vsel %vm195_vm6, %v325_v20, %v192_v26 }
  0xbe   :  { %v201_v29 = vsel %vm198_vm7, %v200_v27, %v196_v28 }
  0xbf   :  { %203 = vst [vmem:[#allocation13] sm:$0xff] %v201_v29 }
  0xc0   :  { %262 = vsyncadd [#allocation4], 112  ;;  %s265_s20 = sshll.u32 %s640_s8, 4  ;;  %s538_s0 = smov [#allocation13]   ;;  %s266_s20 = int_to_ptr.hbm [resolvable:$true] %s265_s20 }
  0xc1   :  { %s263_s21 = sshll.u32 %s538_s0, 4  ;;  %s264_s21 = int_to_ptr.vmem [resolvable:$true] %s263_s21 }
  0xc2   :  { %271 = dma.vmem_to_hbm [thread:$0]  %s264_s21, 16, %s266_s20, [#allocation4], %s531_s14, %s531_s14, %s532_s15  }
  0xc3   :  { %275 = vsyncadd [#allocation15], 112  ;;  %s278_s24 = sshll.u32 %s641_s9, 4  ;;  %s539_s25 = smov [#allocation14]   ;;  %s279_s24 = int_to_ptr.hbm [resolvable:$true] %s278_s24 }
  0xc4   :  { %s276_s26 = sshll.u32 %s539_s25, 4  ;;  %s277_s26 = int_to_ptr.vmem [resolvable:$true] %s276_s26 }
  0xc5   :  { %284 = dma.vmem_to_hbm [thread:$0]  %s277_s26, 16, %s279_s24, [#allocation15], %s531_s14, %s531_s14, %s532_s15  }
  0xc6   :  { %526 = dma.done.wait [#allocation4], 128  }
  0xc7   :  { %527 = vsyncadd [#allocation4], 4294967168 }
  0xc8   :  { %528 = dma.done.wait [#allocation15], 128  }
  0xc9   :  { %529 = vsyncadd [#allocation15], 4294967168 }
  0xca   :  { %293 = vsyncpa [#allocation3], 1 }
  0xcb   :  { %294 = vsyncpa [#allocation6], 1 }
  0xcc   :  { %295 = vsyncpa [#allocation9], 1 }
  0xcd   :  { %296 = vsyncpa [#allocation12], 1 }
  0xce   :  { %297 = vsyncpa [#allocation4], 1 }
  0xcf   :  { %298 = vsyncpa [#allocation15], 1 }

// kernel: tpu_custom_call.1
= control target key start
LH: loop header
LB: loop body
LE: loop exit
PB: predicated region body
PF: predicated region fallthrough
CT: control target
= control target key end

     0   :  { %15 = vsyncpa [#allocation3], 0  ;;  %s632_s0 = inlined_call_operand.hbm [shape: f32[1,4], index: 0, kind: input, shape index: {}]   ;;  %s633_s1 = inlined_call_operand.hbm [shape: f32[1,3], index: 1, kind: input, shape index: {}]   ;;  %s634_s2 = inlined_call_operand.hbm [shape: f32[4,128], index: 2, kind: input, shape index: {}]   ;;  %s635_s3 = inlined_call_operand.hbm [shape: f32[3,128], index: 3, kind: input, shape index: {}]   ;;  %s636_s4 = inlined_call_operand.hbm [shape: f32[1,128], index: 4, kind: input, shape index: {}]   ;;  %s637_s5 = inlined_call_operand.vmem [shape: f32[4,128], index: 5, kind: input, shape index: {}]   ;;  %s638_s6 = inlined_call_operand.hbm [shape: f32[3,128], index: 6, kind: input, shape index: {}]   ;;  %s639_s7 = inlined_call_operand.vmem [shape: f32[1,128], index: 7, kind: input, shape index: {}]   ;;  %s640_s8 = inlined_call_operand.hbm [shape: f32[1,128], index: 8, kind: output, shape index: {0}]   ;;  %s641_s9 = inlined_call_operand.hbm [shape: f32[1,128], index: 9, kind: output, shape index: {1}]  }
   0x1   :  { %16 = vsyncpa [#allocation6], 0 }
   0x2   :  { %17 = vsyncpa [#allocation9], 0 }
   0x3   :  { %18 = vsyncpa [#allocation12], 0 }
   0x4   :  { %19 = vsyncpa [#allocation4], 0 }
   0x5   :  { %20 = vsyncpa [#allocation15], 0 }
   0x6   :  { %24 = vsyncadd [#allocation3], 112  ;;  %s25_s11 = sshll.u32 %s632_s0, 4  ;;  %s530_s12 = smov [#allocation2]   ;;  %s26_s11 = int_to_ptr.hbm [resolvable:$true] %s25_s11 }
   0x7   :  { %s27_s13 = sshll.u32 %s530_s12, 4  ;;  %s531_s14 = smov 16   ;;  %s28_s13 = int_to_ptr.vmem [resolvable:$true] %s27_s13 }
   0x8   :  { %s532_s15 = smov 1  }
   0x9   :  { %33 = dma.hbm_to_vmem [thread:$0]  %s26_s11, 16, %s28_s13, [#allocation3], %s531_s14, %s531_s14, %s532_s15  }
   0xa   :  { %37 = vsyncadd [#allocation6], 112  ;;  %s38_s18 = sshll.u32 %s633_s1, 4  ;;  %s533_s19 = smov [#allocation5]   ;;  %s39_s18 = int_to_ptr.hbm [resolvable:$true] %s38_s18 }
   0xb   :  { %s40_s20 = sshll.u32 %s533_s19, 4  ;;  %s63_s22 = sshll.u32 %s635_s3, 4  ;;  %s41_s20 = int_to_ptr.vmem [resolvable:$true] %s40_s20  ;;  %s64_s22 = int_to_ptr.hbm [resolvable:$true] %s63_s22 }
   0xc   :  { %46 = dma.hbm_to_vmem [thread:$0]  %s39_s18, 16, %s41_s20, [#allocation6], %s531_s14, %s531_s14, %s532_s15  }
   0xd   :  { %s534_s23 = smov [#allocation8]   ;;  %s52_s27 = sshll.u32 %s634_s2, 4  ;;  %s53_s27 = int_to_ptr.hbm [resolvable:$true] %s52_s27 }
   0xe   :  { %s65_s24 = sshll.u32 %s534_s23, 4  ;;  %s74_s29 = sshll.u32 %s636_s4, 4  ;;  %s66_s24 = int_to_ptr.vmem [resolvable:$true] %s65_s24  ;;  %s75_s29 = int_to_ptr.hbm [resolvable:$true] %s74_s29 }
   0xf   :  { %68 = dma.hbm_to_vmem [thread:$0]  %s64_s22, 64, %s66_s24, [#allocation9]  }
  0x10   :  { %s535_s30 = smov [#allocation7]   ;;  %s536_s10 = smov [#allocation10]  }
  0x11   :  { %s54_s3 = sshll.u32 %s535_s30, 4  ;;  %s76_s11 = sshll.u32 %s536_s10, 4  ;;  %s55_s3 = int_to_ptr.vmem [resolvable:$true] %s54_s3  ;;  %s77_s11 = int_to_ptr.vmem [resolvable:$true] %s76_s11 }
  0x12   :  { %57 = dma.hbm_to_vmem [thread:$0]  %s53_s27, 64, %s55_s3, [#allocation6]  }
  0x13   :  { %s87_s16 = sshll.u32 %s638_s6, 4  ;;  %s537_s2 = smov [#allocation11]   ;;  %s88_s16 = int_to_ptr.hbm [resolvable:$true] %s87_s16 }
  0x14   :  { %79 = dma.hbm_to_vmem [thread:$0]  %s75_s29, 16, %s77_s11, [#allocation9]  }
  0x15   :  { %s89_s17 = sshll.u32 %s537_s2, 4  ;;  %s90_s17 = int_to_ptr.vmem [resolvable:$true] %s89_s17 }
  0x16   :  { %92 = dma.hbm_to_vmem [thread:$0]  %s88_s16, 64, %s90_s17, [#allocation12]  }
  0x17   :  { %518 = dma.done.wait [#allocation3], 128  }
  0x18   :  { %519 = vsyncadd [#allocation3], 4294967168 }
  0x19   :  { %520 = dma.done.wait [#allocation6], 192  }
  0x1a   :  { %521 = vsyncadd [#allocation6], 4294967104 }
  0x1b   :  { %522 = dma.done.wait [#allocation9], 80  }
  0x1c   :  { %523 = vsyncadd [#allocation9], 4294967216 }
  0x1d   :  { %524 = dma.done.wait [#allocation12], 64  }
  0x1e   :  { %525 = vsyncadd [#allocation12], 4294967232  ;;  %vm127_vm0 = vcmask 1042432   ;;  %vm155_vm1 = vcmask 1043456   ;;  %vm123_vm2 = vcmask 23552   ;;  %vm151_vm3 = vcmask 31744  }
  0x1f   :  { %v122_v0 = vld [vmem:[#allocation8] sm:$0x7]  ;;  %v121_v1 = vld [vmem:[#allocation7] sm:$0xf]  ;;  %v120_v2 = vld [vmem:[#allocation5] sm:$0xff] }
  0x20   :  { %299 = vmatpush.msk.msra.mxu0 %vm127_vm0, %v122_v0  ;;  %301 = vmatpush.msk.msra.mxu1 %vm155_vm1, %v121_v1  ;;  %v119_v3 = vld [vmem:[#allocation2] sm:$0xff]  ;;  %v205_v4 = vld [vmem:[#allocation11] sm:$0x7]  ;;  %v318_v6 = vld [vmem:[#allocation10] ss:$0 sm:$0xff] }
  0x21   :  { %v204_v5 = vld [vmem:[%s637_s5] sm:$0xf]  ;;  %300 = vmatmul.msk.f32.vlgmr.msra.gmra.mxu0 %vm123_vm2, %v120_v2  ;;  %302 = vmatmul.msk.f32.vlgmr.msra.gmra.mxu1 %vm151_vm3, %v119_v3 }
  0x22   :  { %304 = vmatpush.msk.msra.mxu2 %vm127_vm0, %v205_v4  ;;  %306 = vmatpush.msk.msra.mxu3 %vm155_vm1, %v204_v5  ;;  %v319_v12 = vld [vmem:[%s639_s7] ss:$0 sm:$0xff] }
  0x23   :  { %305 = vmatmul.msk.f32.vlgmr.msra.gmra.mxu2 %vm123_vm2, %v120_v2  ;;  %307 = vmatmul.msk.f32.vlgmr.msra.gmra.mxu3 %vm151_vm3, %v119_v3 }
  0x9e   :  { %v148_v7 = vpop.f32.mrf.mxu0  ;;  %v176_v8 = vpop.f32.mrf.mxu1 }
  0x9f   :  { %v177_v9 = vadd.f32 %v176_v8, %v148_v7 }
  0xa1   :  { %v183_v10 = vadd.f32 %v318_v6, %v177_v9 }
  0xa3   :  { %v303_v11 = vmul.f32 -1.442695, %v183_v10 }
  0xa5   :  { %320 = vpow2.f32 %v303_v11 }
  0xa6   :  { %v226_v13 = vpop.f32.mrf.mxu2  ;;  %v249_v14 = vpop.f32.mrf.mxu3 }
  0xa7   :  { %v250_v15 = vadd.f32 %v249_v14, %v226_v13 }
  0xa9   :  { %v256_v16 = vadd.f32 %v319_v12, %v250_v15 }
  0xab   :  { %v321_v17 = vpop.eup %320  ;;  %322 = vtanh.f32 %v256_v16 }
  0xac   :  { %v187_v18 = vadd.f32 1.0, %v321_v17 }
  0xae   :  { %324 = vrcp.f32 %v187_v18  ;;  %v199_v23 = vand.u32 2147483648, %v187_v18  ;;  %v197_v25 = vand.u32 2147483647, %v187_v18  ;;  %vm193_vm5 = vweird.f32 %v187_v18 }
  0xb0   :  { %v200_v27 = vor.u32 1.1754944e-38, %v199_v23  ;;  %vm198_vm7 = vcmp.eq.f32.partialorder %v197_v25, 8.507059e+37 }
  0xb1   :  { %v323_v19 = vpop.eup %322 }
  0xb2   :  { %258 = vst [vmem:[#allocation14] sm:$0xff] %v323_v19 }
  0xb4   :  { %v325_v20 = vpop.eup %324 }
  0xb5   :  { %v189_v21 = vmul.f32 %v325_v20, %v187_v18  ;;  %vm194_vm4 = vweird.f32 %v325_v20 }
  0xb6   :  { %vm195_vm6 = vmor %vm193_vm5, %vm194_vm4 }
  0xb7   :  { %v190_v22 = vsub.f32 1.0, %v189_v21 }
  0xb9   :  { %v191_v24 = vmul.f32 %v325_v20, %v190_v22 }
  0xbb   :  { %v192_v26 = vadd.f32 %v325_v20, %v191_v24 }
  0xbd   :  { %v196_v28 = vsel %vm195_vm6, %v325_v20, %v192_v26 }
  0xbe   :  { %v201_v29 = vsel %vm198_vm7, %v200_v27, %v196_v28 }
  0xbf   :  { %203 = vst [vmem:[#allocation13] sm:$0xff] %v201_v29 }
  0xc0   :  { %262 = vsyncadd [#allocation4], 112  ;;  %s265_s20 = sshll.u32 %s640_s8, 4  ;;  %s538_s0 = smov [#allocation13]   ;;  %s266_s20 = int_to_ptr.hbm [resolvable:$true] %s265_s20 }
  0xc1   :  { %s263_s21 = sshll.u32 %s538_s0, 4  ;;  %s264_s21 = int_to_ptr.vmem [resolvable:$true] %s263_s21 }
  0xc2   :  { %271 = dma.vmem_to_hbm [thread:$0]  %s264_s21, 16, %s266_s20, [#allocation4], %s531_s14, %s531_s14, %s532_s15  }
  0xc3   :  { %275 = vsyncadd [#allocation15], 112  ;;  %s278_s24 = sshll.u32 %s641_s9, 4  ;;  %s539_s25 = smov [#allocation14]   ;;  %s279_s24 = int_to_ptr.hbm [resolvable:$true] %s278_s24 }
  0xc4   :  { %s276_s26 = sshll.u32 %s539_s25, 4  ;;  %s277_s26 = int_to_ptr.vmem [resolvable:$true] %s276_s26 }
  0xc5   :  { %284 = dma.vmem_to_hbm [thread:$0]  %s277_s26, 16, %s279_s24, [#allocation15], %s531_s14, %s531_s14, %s532_s15  }
  0xc6   :  { %526 = dma.done.wait [#allocation4], 128  }
  0xc7   :  { %527 = vsyncadd [#allocation4], 4294967168 }
  0xc8   :  { %528 = dma.done.wait [#allocation15], 128  }
  0xc9   :  { %529 = vsyncadd [#allocation15], 4294967168 }
  0xca   :  { %293 = vsyncpa [#allocation3], 1 }
  0xcb   :  { %294 = vsyncpa [#allocation6], 1 }
  0xcc   :  { %295 = vsyncpa [#allocation9], 1 }
  0xcd   :  { %296 = vsyncpa [#allocation12], 1 }
  0xce   :  { %297 = vsyncpa [#allocation4], 1 }
  0xcf   :  { %298 = vsyncpa [#allocation15], 1 }

</bundles_post_ra>
